<compile_context>
chip_gen: v5e
topology: v5e:2x2
jax: 0.10.0
libtpu: 0.0.40
codegen_flags: <defaults>
</compile_context>

<pallas_src>
import functools

import jax
import jax.numpy as jnp
from jax import lax
from jax.experimental import pallas as pl
from jax.experimental.pallas import tpu as pltpu


# ---------------------------------------------------------------------------
# Kernel
# ---------------------------------------------------------------------------
def _conv_bn_relu6_kernel(x_ref, w_ref, b_ref, o_ref, *, K, Hout, B, Lpad, WC):
    # x_ref block: (B, Hp, Lpad)        bf16, lane-padded (W*Cin -> Lpad) image
    # w_ref block: (K*Lpad, WC)         bf16, BN-scale-folded structured weight
    # b_ref block: (1, WC)              f32, BN shift tiled over w
    # o_ref block: (B, Hout, WC)        f32, lane-dense output
    x3 = x_ref[...]                                       # (B, Hp, Lpad)

    # K row-shifted bands concatenated along lanes; every segment is exactly
    # Lpad (=multiple of 128) wide, so the concat is aligned vreg stacking.
    bands = [x3[:, ky:ky + Hout, :] for ky in range(K)]   # K x (B, Hout, Lpad)
    xcat = jnp.concatenate(bands, axis=2)                 # (B, Hout, K*Lpad)
    xcat = xcat.reshape(B * Hout, K * Lpad)

    # Single MXU matmul per grid step: conv + BN scale, bf16 operands, f32 acc.
    y = jnp.dot(xcat, w_ref[...], preferred_element_type=jnp.float32)

    # BN shift + ReLU6 on the VPU (f32).
    y = jnp.clip(y + b_ref[...], 0.0, 6.0)
    o_ref[...] = y.reshape(B, Hout, WC)


# ---------------------------------------------------------------------------
# Parameter preparation (done once per weight set, NOT per forward call)
# ---------------------------------------------------------------------------
def _fold_bn(gamma, beta, mean, var, eps=1e-5):
    scale = gamma / jnp.sqrt(var + eps)
    shift = beta - mean * scale
    return scale, shift


def _build_structured_weight(w_oihw, scale, *, K, Cin, Cout, Wp, Wout, Lpad):
    """Build the (K*Lpad, Wout*Cout) bf16 matmul weight.

    wcat[ky, wi*Cin+ci, w*Cout+co] = w_oihw[co, ci, ky, wi - w] * scale[co]
                                     if 0 <= wi - w < K else 0
    Rows wi*Cin+ci >= Wp*Cin (the lane padding up to Lpad) are zero.
    """
    wf = jnp.transpose(w_oihw, (2, 3, 1, 0)) * scale[None, None, None, :]  # (K,K,Cin,Cout)

    wi = jnp.arange(Wp)[:, None]               # (Wp, 1)
    w = jnp.arange(Wout)[None, :]              # (1, Wout)
    kx = wi - w                                # (Wp, Wout)
    valid = (kx >= 0) & (kx < K)
    kx_c = jnp.clip(kx, 0, K - 1)

    g = wf[:, kx_c, :, :]                      # (K, Wp, Wout, Cin, Cout)
    g = jnp.where(valid[None, :, :, None, None], g, 0.0)
    wcat = jnp.transpose(g, (0, 1, 3, 2, 4))   # (K, Wp, Cin, Wout, Cout)
    wcat = wcat.reshape(K, Wp * Cin, Wout * Cout)
    wcat = jnp.pad(wcat, ((0, 0), (0, Lpad - Wp * Cin), (0, 0)))   # lane-pad rows
    return wcat.reshape(K * Lpad, Wout * Cout).astype(jnp.bfloat16)


def prepare_basic_conv2d(params, *, in_dims, out_dims, H, W,
                         kernel_size=3, padding=1):
    """Precompute everything that depends only on weights + geometry."""
    K, Cin, Cout = kernel_size, in_dims, out_dims
    Hp, Wp = H + 2 * padding, W + 2 * padding
    Hout, Wout = Hp - K + 1, Wp - K + 1
    WC = Wout * Cout
    Lpad = pl.cdiv(Wp * Cin, 128) * 128        # lane-align the concat segments

    wcat = _build_structured_weight(params["w"], params["scale"],
                                    K=K, Cin=Cin, Cout=Cout,
                                    Wp=Wp, Wout=Wout, Lpad=Lpad)
    brow = jnp.tile(params["shift"], Wout).reshape(1, WC).astype(jnp.float32)

    # NOTE: output lane width WC should be a multiple of 128 for unmasked
    # full-width stores (here WC == 128 exactly); other shapes stay correct but
    # fall back to masked partial stores.
    return dict(wcat=wcat, brow=brow, K=K, padding=padding,
                Hp=Hp, Wp=Wp, Hout=Hout, Wout=Wout,
                Cin=Cin, Cout=Cout, WC=WC, Lpad=Lpad)


def _pick_batch_tile(N, Hout, target_rows=256):
    """Pick images-per-step B so B*Hout ~ target MXU M-dim and B | N."""
    B = max(1, min(N, max(1, target_rows // max(Hout, 1))))
    while N % B != 0:
        B -= 1
    return B


# ---------------------------------------------------------------------------
# Forward wrapper (PyTorch NCHW in / NCHW out)
# ---------------------------------------------------------------------------
def basic_conv2d(x_nchw, prep, *, stride=1):
    assert stride == 1  # TODO(synk): strided conv not implemented in the kernel.

    N, Cin, H, W = x_nchw.shape
    K, p = prep["K"], prep["padding"]
    Hp, Wp, Hout, Wout = prep["Hp"], prep["Wp"], prep["Hout"], prep["Wout"]
    Cout, WC, Lpad = prep["Cout"], prep["WC"], prep["Lpad"]
    assert Cin == prep["Cin"]

    # NCHW -> NHWC; fold spatial pad + lane pad (W*Cin -> Lpad) into one pad
    # when possible; cast to bf16 (halves input DMA bytes, native MXU dtype).
    x = jnp.transpose(x_nchw, (0, 2, 3, 1)).astype(jnp.float32)
    if Lpad % Cin == 0:
        extra_w = Lpad // Cin - Wp
        xp = jnp.pad(x, ((0, 0), (p, p), (p, p + extra_w), (0, 0)))
        x2 = xp.reshape(N, Hp, Lpad).astype(jnp.bfloat16)
    else:
        xp = jnp.pad(x, ((0, 0), (p, p), (p, p), (0, 0)))
        x2 = xp.reshape(N, Hp, Wp * Cin)
        x2 = jnp.pad(x2, ((0, 0), (0, 0), (0, Lpad - Wp * Cin))).astype(jnp.bfloat16)

    B = _pick_batch_tile(N, Hout)
    steps = N // B

    # VMEM budget: 2x double-buffered x block + 2x out block + weight + shift.
    x_blk = B * Hp * Lpad * 2
    o_blk = B * Hout * WC * 4
    w_blk = K * Lpad * WC * 2 + WC * 4
    vmem_bytes = 2 * x_blk + 2 * o_blk + w_blk
    assert vmem_bytes < 32 * 1024 * 1024, vmem_bytes  # v7x has 64 MiB physical

    kernel = functools.partial(_conv_bn_relu6_kernel,
                               K=K, Hout=Hout, B=B, Lpad=Lpad, WC=WC)

    cost = pl.CostEstimate(
        flops=2 * N * Hout * (K * Lpad) * WC,
        transcendentals=0,
        bytes_accessed=(N * Hp * Lpad * 2 + K * Lpad * WC * 2
                        + WC * 4 + N * Hout * WC * 4),
    )

    out2 = pl.pallas_call(
        kernel,
        out_shape=jax.ShapeDtypeStruct((N, Hout, WC), jnp.float32),
        grid_spec=pltpu.PrefetchScalarGridSpec(
            num_scalar_prefetch=0,
            grid=(steps,),
            in_specs=[
                pl.BlockSpec((B, Hp, Lpad), lambda i: (i, 0, 0)),      # x
                pl.BlockSpec((K * Lpad, WC), lambda i: (0, 0)),        # wcat
                pl.BlockSpec((1, WC), lambda i: (0, 0)),               # shift
            ],
            out_specs=pl.BlockSpec((B, Hout, WC), lambda i: (i, 0, 0)),
        ),
        compiler_params=pltpu.CompilerParams(
            dimension_semantics=("parallel",),
        ),
        cost_estimate=cost,
    )(x2, prep["wcat"], prep["brow"])

    out = out2.reshape(N, Hout, Wout, Cout)
    return jnp.transpose(out, (0, 3, 1, 2))      # back to NCHW


# ---------------------------------------------------------------------------
# Deterministic parameters + pure-JAX reference
# ---------------------------------------------------------------------------
def make_params(key, in_dims, out_dims, kernel_size):
    ks = jax.random.split(key, 5)
    w = (0.1 * jax.random.normal(
        ks[0], (out_dims, in_dims, kernel_size, kernel_size))).astype(jnp.float32)
    gamma = (1.0 + 0.1 * jax.random.normal(ks[1], (out_dims,))).astype(jnp.float32)
    beta = (0.1 * jax.random.normal(ks[2], (out_dims,))).astype(jnp.float32)
    mean = (0.1 * jax.random.normal(ks[3], (out_dims,))).astype(jnp.float32)
    var = (0.5 + jnp.abs(jax.random.normal(ks[4], (out_dims,)))).astype(jnp.float32)
    scale, shift = _fold_bn(gamma, beta, mean, var)
    return {"w": w, "scale": scale, "shift": shift}


def ref_forward(x_nchw, params, *, stride=1, padding=1):
    """Pure-JAX reference: Conv2d(bias=False) + BN(inference) + ReLU6."""
    y = lax.conv_general_dilated(
        x_nchw.astype(jnp.float32), params["w"],
        window_strides=(stride, stride),
        padding=[(padding, padding), (padding, padding)],
        dimension_numbers=("NCHW", "OIHW", "NCHW"))
    y = y * params["scale"][None, :, None, None] + params["shift"][None, :, None, None]
    return jnp.clip(y, 0.0, 6.0)


if __name__ == "__main__":
    # Small shapes consistent with the module: N=2, in_dims=4, out_dims=8,
    # H=W=16, kernel_size=3, padding=1, stride=1  ->  Wout*Cout = 128 lanes.
    N, IN_DIMS, OUT_DIMS, H, W, KSIZE, PAD = 2, 4, 8, 16, 16, 3, 1

    key = jax.random.PRNGKey(0)
    kx, kp = jax.random.split(key)
    x = jax.random.normal(kx, (N, IN_DIMS, H, W), dtype=jnp.float32)
    params = make_params(kp, IN_DIMS, OUT_DIMS, KSIZE)

    # Weight build hoisted out of the forward (computed once per weight set).
    prep = prepare_basic_conv2d(params, in_dims=IN_DIMS, out_dims=OUT_DIMS,
                                H=H, W=W, kernel_size=KSIZE, padding=PAD)

    out = basic_conv2d(x, prep, stride=1)
    out = jax.block_until_ready(out)

    ref = jax.block_until_ready(ref_forward(x, params, stride=1, padding=PAD))
    assert out.shape == (N, OUT_DIMS, H, W), out.shape
    # bf16 MXU operands (f32 accumulation) -> loosened tolerance vs f32 ref.
    assert jnp.allclose(out, ref, atol=2e-2, rtol=2e-2), float(
        jnp.max(jnp.abs(out - ref)))

    print("KERNEL_OK")
</pallas_src>

<mosaic_0001>
module attributes {stable_mosaic.version = 11 : i64} {
  func.func @_conv_bn_relu6_kernel(%arg0: i32, %arg1: memref<2x18x128xbf16, #tpu.memory_space<vmem>>, %arg2: memref<384x128xbf16, #tpu.memory_space<vmem>>, %arg3: memref<1x128xf32, #tpu.memory_space<vmem>>, %arg4: memref<2x16x128xf32, #tpu.memory_space<vmem>>) attributes {dimension_semantics = [#tpu.dimension_semantics<parallel>], iteration_bounds = array<i64: 1>, scalar_prefetch = 0 : i64, scratch_operands = 0 : i64, tpu.core_type = #tpu.core_type<tc>, window_params = [{transform_indices = @transform_0, window_bounds = array<i64: 2, 18, 128>}, {pipeline_mode = #tpu.pipeline_mode<synchronous>, transform_indices = @transform_1, window_bounds = array<i64: 384, 128>}, {pipeline_mode = #tpu.pipeline_mode<synchronous>, transform_indices = @transform_2, window_bounds = array<i64: 1, 128>}, {transform_indices = @transform_3, window_bounds = array<i64: 2, 16, 128>}]} {
    %c0 = arith.constant 0 : index
    %c0_0 = arith.constant 0 : index
    %c0_1 = arith.constant 0 : index
    %0 = vector.load %arg1[%c0, %c0_0, %c0_1] : memref<2x18x128xbf16, #tpu.memory_space<vmem>>, vector<2x18x128xbf16>
    %1 = vector.extract_strided_slice %0 {offsets = [0, 0, 0], sizes = [2, 16, 128], strides = [1, 1, 1]} : vector<2x18x128xbf16> to vector<2x16x128xbf16>
    %2 = vector.extract_strided_slice %0 {offsets = [0, 1, 0], sizes = [2, 16, 128], strides = [1, 1, 1]} : vector<2x18x128xbf16> to vector<2x16x128xbf16>
    %3 = vector.extract_strided_slice %0 {offsets = [0, 2, 0], sizes = [2, 16, 128], strides = [1, 1, 1]} : vector<2x18x128xbf16> to vector<2x16x128xbf16>
    %4 = tpu.concatenate %1, %2, %3 in 2 : vector<2x16x128xbf16>, vector<2x16x128xbf16>, vector<2x16x128xbf16> -> vector<2x16x384xbf16>
    %5 = vector.shape_cast %4 : vector<2x16x384xbf16> to vector<32x384xbf16>
    %c0_2 = arith.constant 0 : index
    %c0_3 = arith.constant 0 : index
    %6 = vector.load %arg2[%c0_2, %c0_3] : memref<384x128xbf16, #tpu.memory_space<vmem>>, vector<384x128xbf16>
    %cst = arith.constant dense<0.000000e+00> : vector<32x128xf32>
    %7 = tpu.matmul %5, %6, %cst {dimension_numbers = #tpu.dot_dimension_numbers<[1], [0], [0], [1], [0, 0, 1, 1], [], []>} : vector<32x384xbf16>, vector<384x128xbf16>, vector<32x128xf32> -> vector<32x128xf32>
    %c0_4 = arith.constant 0 : index
    %c0_5 = arith.constant 0 : index
    %8 = vector.load %arg3[%c0_4, %c0_5] : memref<1x128xf32, #tpu.memory_space<vmem>>, vector<1x128xf32>
    %9 = vector.broadcast %8 : vector<1x128xf32> to vector<32x128xf32>
    %10 = arith.addf %7, %9 : vector<32x128xf32>
    %cst_6 = arith.constant 0.000000e+00 : f32
    %cst_7 = arith.constant 6.000000e+00 : f32
    %11 = vector.broadcast %cst_6 : f32 to vector<32x128xf32>
    %12 = arith.maximumf %11, %10 : vector<32x128xf32>
    %13 = vector.broadcast %cst_7 : f32 to vector<32x128xf32>
    %14 = arith.minimumf %13, %12 : vector<32x128xf32>
    %15 = vector.shape_cast %14 : vector<32x128xf32> to vector<2x16x128xf32>
    %c0_8 = arith.constant 0 : index
    %c0_9 = arith.constant 0 : index
    %c0_10 = arith.constant 0 : index
    %16 = vector.load %arg4[%c0_8, %c0_9, %c0_10] : memref<2x16x128xf32, #tpu.memory_space<vmem>>, vector<2x16x128xf32>
    tpu.vector_store %arg4[%c0_8, %c0_9, %c0_10], %15 {strides = array<i32>} : memref<2x16x128xf32, #tpu.memory_space<vmem>>, vector<2x16x128xf32>,
    return
  }
  func.func @transform_0(%arg0: i32) -> (i32, i32, i32) {
    %c0_i32 = arith.constant 0 : i32
    %c0_i32_0 = arith.constant 0 : i32
    %c0_i32_1 = arith.constant 0 : i32
    return %arg0, %c0_i32, %c0_i32_0 : i32, i32, i32
  }
  func.func @transform_1(%arg0: i32) -> (i32, i32) {
    %c0_i32 = arith.constant 0 : i32
    %c0_i32_0 = arith.constant 0 : i32
    %c0_i32_1 = arith.constant 0 : i32
    return %c0_i32, %c0_i32_0 : i32, i32
  }
  func.func @transform_2(%arg0: i32) -> (i32, i32) {
    %c0_i32 = arith.constant 0 : i32
    %c0_i32_0 = arith.constant 0 : i32
    %c0_i32_1 = arith.constant 0 : i32
    return %c0_i32, %c0_i32_0 : i32, i32
  }
  func.func @transform_3(%arg0: i32) -> (i32, i32, i32) {
    %c0_i32 = arith.constant 0 : i32
    %c0_i32_0 = arith.constant 0 : i32
    %c0_i32_1 = arith.constant 0 : i32
    return %arg0, %c0_i32, %c0_i32_0 : i32, i32, i32
  }
}

</mosaic_0001>

<bundles_post_ra>
// kernel: tpu_custom_call.1
= control target key start
LH: loop header
LB: loop body
LE: loop exit
PB: predicated region body
PF: predicated region fallthrough
CT: control target
= control target key end

     0   :  { %8 = vsyncpa [#allocation3], 0  ;;  %s623_s0 = inlined_call_operand.vmem [shape: bf16[2,18,128], index: 0, kind: input, shape index: {}]   ;;  %s624_s1 = inlined_call_operand.hbm [shape: bf16[384,128], index: 1, kind: input, shape index: {}]   ;;  %s625_s2 = inlined_call_operand.vmem [shape: f32[1,128], index: 2, kind: input, shape index: {}]   ;;  %s626_s3 = inlined_call_operand.hbm [shape: f32[2,16,128], index: 3, kind: output, shape index: {}]  }
   0x1   :  { %9 = vsyncpa [#allocation4], 0  ;;  %s16_s14 = sshll.u32 %s624_s1, 4  ;;  %s572_s15 = smov [#allocation2]   ;;  %s17_s14 = int_to_ptr.hbm [resolvable:$true] %s16_s14 }
   0x2   :  { %s18_s16 = sshll.u32 %s572_s15, 4  ;;  %s573_s17 = smov 64   ;;  %s19_s16 = int_to_ptr.vmem [resolvable:$true] %s18_s16 }
   0x3   :  { %s574_s18 = smov 4  }
   0x4   :  { %24 = dma.hbm_to_vmem [thread:$0]  %s17_s14, 3072, %s19_s16, [#allocation3], %s573_s17, %s573_s17, %s574_s18  }
   0x5   :  { %568 = dma.done.wait [#allocation3], 3072  }
   0x6   :  { %569 = vsyncadd [#allocation3], 4294964224  ;;  %v488_v0 = vld [vmem:[#allocation2 + $0x38] sm:$0xff]  ;;  %v487_v3 = vld [vmem:[#allocation2 + $0x30] sm:$0xff]  ;;  %vm55_vm0 = vsmask.f32 7424 }
   0x7   :  { %v496_v1 = vld [vmem:[#allocation2 + $0x78] sm:$0xff]  ;;  %287 = vmatpush.bf16.msra.mxu0 %v488_v0  ;;  %v495_v4 = vld [vmem:[#allocation2 + $0x70] sm:$0xff]  ;;  %505 = vmatpush.bf16.msra.mxu3 %v488_v0  ;;  %v486_v6 = vld [vmem:[#allocation2 + $0x28] sm:$0xff]  ;;  %vm82_vm1 = vcmask 1046528   ;;  %s362_s30 = sshll.u32 %s626_s3, 4  ;;  %s576_s4 = smov 128   ;;  %s363_s30 = int_to_ptr.hbm [resolvable:$true] %s362_s30 }
   0x8   :  { %v504_v2 = vld [vmem:[#allocation2 + $0xb8] sm:$0xff]  ;;  %306 = vmatpush.bf16.msra.mxu1 %v496_v1  ;;  %v503_v5 = vld [vmem:[#allocation2 + $0xb0] sm:$0xff]  ;;  %v494_v7 = vld [vmem:[#allocation2 + $0x68] sm:$0xff]  ;;  %s577_s5 = smov 8  }
   0x9   :  { %325 = vmatpush.bf16.msra.mxu2 %v504_v2  ;;  %v502_v8 = vld [vmem:[#allocation2 + $0xa8] sm:$0xff]  ;;  %v485_v9 = vld [vmem:[#allocation2 + $0x20] sm:$0xff]  ;;  %v484_v13 = vld [vmem:[#allocation2 + $0x18] sm:$0xff] }
   0xa   :  { %v493_v10 = vld [vmem:[#allocation2 + $0x60] sm:$0xff]  ;;  %v33_v12 = vld [vmem:[%s623_s0 + $0x8] sm:$0x1]  ;;  %v492_v14 = vld [vmem:[#allocation2 + $0x58] sm:$0xff] }
   0xb   :  { %288 = vmatpush.bf16.msra.mxu0 %v487_v3  ;;  %506 = vmatpush.bf16.msra.mxu3 %v487_v3  ;;  %v501_v11 = vld [vmem:[#allocation2 + $0xa0] sm:$0xff]  ;;  %v51_v16 = vunpack.c.l.b16 %v33_v12  ;;  %v500_v17 = vld [vmem:[#allocation2 + $0x98] sm:$0xff]  ;;  %v483_v18 = vld [vmem:[#allocation2 + $0x10] sm:$0xff] }
   0xc   :  { %307 = vmatpush.bf16.msra.mxu1 %v495_v4  ;;  %v479_v15 = vld [vmem:[%s623_s0] sm:$0xff]  ;;  %v491_v19 = vld [vmem:[#allocation2 + $0x50] sm:$0xff]  ;;  %v482_v23 = vld [vmem:[#allocation2 + $0x8] sm:$0xff] }
   0xd   :  { %326 = vmatpush.bf16.msra.mxu2 %v503_v5  ;;  %v53_v20 = vpack.c.b16 %v51_v16, %v51_v16  ;;  %v59_v21 = vshll.u32 %v479_v15, 16  ;;  %v499_v22 = vld [vmem:[#allocation2 + $0x90] sm:$0xff]  ;;  %v490_v24 = vld [vmem:[#allocation2 + $0x48] sm:$0xff]  ;;  %v57_v25 = vshrl.u32 %v479_v15, 16  ;;  %v481_v29 = vld [vmem:[#allocation2] sm:$0xff]  ;;  %v83_v34 = vrot.slane %v479_v15, 1 }
   0xe   :  { %v498_v28 = vld [vmem:[#allocation2 + $0x88] sm:$0xff]  ;;  %v489_v30 = vld [vmem:[#allocation2 + $0x40] sm:$0xff]  ;;  %v36_v36 = vld [vmem:[%s623_s0 + $0x14] sm:$0x1] }
   0xf   :  { %289 = vmatpush.bf16.msra.mxu0 %v486_v6  ;;  %507 = vmatpush.bf16.msra.mxu3 %v486_v6  ;;  %v61_v26 = vrot.slane %v59_v21, 1  ;;  %v64_v27 = vshll.u32 %v53_v20, 16  ;;  %v497_v33 = vld [vmem:[#allocation2 + $0x80] sm:$0xff]  ;;  %v84_v35 = vrot.slane %v53_v20, 1  ;;  %v480_v38 = vld [vmem:[%s623_s0 + $0xc] sm:$0xff]  ;;  %v52_v39 = vunpack.c.l.b16 %v36_v36 }
  0x10   :  { %308 = vmatpush.bf16.msra.mxu1 %v494_v7  ;;  %v71_v42 = vshll.u32 %v480_v38, 16  ;;  %v69_v43 = vshrl.u32 %v480_v38, 16  ;;  %v86_v48 = vrot.slane %v480_v38, 1  ;;  %v519_v52 = vld [vmem:[%s625_s2] ss:$0 sm:$0xff]  ;;  %s575_s2 = smov [#allocation5]  }
  0x11   :  { %327 = vmatpush.bf16.msra.mxu2 %v502_v8  ;;  %v62_v31 = vor.u32 %v61_v26, %v57_v25  ;;  %v66_v32 = vrot.slane %v64_v27, 1  ;;  %v85_v40 = vsel %vm82_vm1, %v83_v34, %v84_v35  ;;  %v54_v41 = vpack.c.b16 %v52_v39, %v52_v39  ;;  %s360_s27 = sshll.u32 %s575_s2, 4  ;;  %s361_s27 = int_to_ptr.vmem [resolvable:$true] %s360_s27 }
  0x12   :  { %v73_v44 = vrot.slane %v71_v42, 1 }
  0x13   :  { %290 = vmatpush.bf16.msra.mxu0 %v485_v9  ;;  %508 = vmatpush.bf16.msra.mxu3 %v485_v9  ;;  %v67_v37 = vsel %vm55_vm0, %v62_v31, %v66_v32  ;;  %v76_v45 = vshll.u32 %v54_v41, 16  ;;  %v87_v49 = vrot.slane %v54_v41, 1 }
  0x14   :  { %309 = vmatpush.bf16.msra.mxu1 %v493_v10  ;;  %v74_v46 = vor.u32 %v73_v44, %v69_v43 }
  0x15   :  { %328 = vmatpush.bf16.msra.mxu2 %v501_v11  ;;  %v78_v47 = vrot.slane %v76_v45, 1  ;;  %v88_v51 = vsel %vm82_vm1, %v86_v48, %v87_v49 }
  0x17   :  { %291 = vmatpush.bf16.msra.mxu0 %v484_v13  ;;  %509 = vmatpush.bf16.msra.mxu3 %v484_v13  ;;  %v79_v50 = vsel %vm55_vm0, %v74_v46, %v78_v47 }
  0x18   :  { %310 = vmatpush.bf16.msra.mxu1 %v492_v14 }
  0x19   :  { %329 = vmatpush.bf16.msra.mxu2 %v500_v17 }
  0x1b   :  { %292 = vmatpush.bf16.msra.mxu0 %v483_v18  ;;  %510 = vmatpush.bf16.msra.mxu3 %v483_v18 }
  0x1c   :  { %311 = vmatpush.bf16.msra.mxu1 %v491_v19 }
  0x1d   :  { %330 = vmatpush.bf16.msra.mxu2 %v499_v22 }
  0x1f   :  { %293 = vmatpush.bf16.msra.mxu0 %v482_v23  ;;  %511 = vmatpush.bf16.msra.mxu3 %v482_v23 }
  0x20   :  { %312 = vmatpush.bf16.msra.mxu1 %v490_v24 }
  0x21   :  { %331 = vmatpush.bf16.msra.mxu2 %v498_v28 }
  0x23   :  { %294 = vmatpush.bf16.msra.mxu0 %v481_v29  ;;  %512 = vmatpush.bf16.msra.mxu3 %v481_v29 }
  0x24   :  { %313 = vmatpush.bf16.msra.mxu1 %v489_v30 }
  0x25   :  { %332 = vmatpush.bf16.msra.mxu2 %v497_v33 }
  0x26   :  { %295 = vmatmul.bf16.vlgmr.msra.gmra.mxu0 %v479_v15  ;;  %300 = vmatmul.bf16.vlgmr.msra.gmra.mxu3 %v480_v38 }
  0x27   :  { %314 = vmatmul.bf16.vlgmr.msra.gmra.mxu1 %v67_v37 }
  0x28   :  { %333 = vmatmul.bf16.vlgmr.msra.gmra.mxu2 %v85_v40 }
  0x37   :  { %319 = vmatmul.bf16.gmra.mxu1 %v79_v50 }
  0x38   :  { %338 = vmatmul.bf16.gmra.mxu2 %v88_v51 }
  0xa3   :  { %v296_v53 = vpop.f32.mrf.mxu0 }
  0xa4   :  { %v315_v54 = vpop.f32.mrf.mxu1  ;;  %v297_v55 = vadd.f32 %v519_v52, %v296_v53 }
  0xa6   :  { %v316_v56 = vadd.f32 %v315_v54, %v297_v55 }
  0xa9   :  { %v301_v1 = vpop.f32.mrf.mxu3 }
  0xaa   :  { %v302_v3 = vadd.f32 %v519_v52, %v301_v1 }
  0xab   :  { %v334_v57 = vpop.f32.mrf.mxu2  ;;  %v298_v59 = vpop.f32.mrf.mxu0 }
  0xac   :  { %v335_v58 = vadd.f32 %v334_v57, %v316_v56  ;;  %v317_v60 = vpop.f32.mrf.mxu1  ;;  %v299_v62 = vadd.f32 %v519_v52, %v298_v59 }
  0xae   :  { %v344_v61 = vmax.f32 %v335_v58, 0.0  ;;  %v318_v0 = vadd.f32 %v317_v60, %v299_v62 }
  0xb0   :  { %v348_v63 = vmin.f32 %v344_v61, 6.0 }
  0xb1   :  { %v303_v11 = vpop.f32.mrf.mxu3 }
  0xb2   :  { %352 = vst [vmem:[#allocation5] sm:$0xff] %v348_v63  ;;  %v304_v14 = vadd.f32 %v519_v52, %v303_v11 }
  0xb3   :  { %v336_v2 = vpop.f32.mrf.mxu2 }
  0xb4   :  { %v337_v4 = vadd.f32 %v336_v2, %v318_v0  ;;  %v320_v5 = vpop.f32.mrf.mxu1 }
  0xb5   :  { %v321_v8 = vadd.f32 %v320_v5, %v302_v3 }
  0xb6   :  { %v345_v6 = vmax.f32 %v337_v4, 0.0 }
  0xb8   :  { %v349_v7 = vmin.f32 %v345_v6, 6.0 }
  0xba   :  { %353 = vst [vmem:[#allocation5 + $0x8] sm:$0xff] %v349_v7 }
  0xbb   :  { %v339_v9 = vpop.f32.mrf.mxu2 }
  0xbc   :  { %v340_v10 = vadd.f32 %v339_v9, %v321_v8  ;;  %v322_v13 = vpop.f32.mrf.mxu1 }
  0xbd   :  { %v323_v16 = vadd.f32 %v322_v13, %v304_v14 }
  0xbe   :  { %v346_v12 = vmax.f32 %v340_v10, 0.0 }
  0xc0   :  { %v350_v15 = vmin.f32 %v346_v12, 6.0 }
  0xc2   :  { %354 = vst [vmem:[#allocation5 + $0x10] sm:$0xff] %v350_v15 }
  0xc3   :  { %v341_v17 = vpop.f32.mrf.mxu2 }
  0xc4   :  { %v342_v18 = vadd.f32 %v341_v17, %v323_v16 }
  0xc6   :  { %v347_v19 = vmax.f32 %v342_v18, 0.0 }
  0xc8   :  { %v351_v20 = vmin.f32 %v347_v19, 6.0 }
  0xca   :  { %355 = vst [vmem:[#allocation5 + $0x18] sm:$0xff] %v351_v20 }
  0xcb   :  { %368 = dma.vmem_to_hbm [thread:$0]  %s361_s27, 512, %s363_s30, [#allocation4], %s576_s4, %s576_s4, %s577_s5  }
  0xcc   :  { %570 = dma.done.wait [#allocation4], 512  }
  0xcd   :  { %571 = vsyncadd [#allocation4], 4294966784 }
  0xce   :  { %373 = vsyncpa [#allocation3], 1 }
  0xcf   :  { %374 = vsyncpa [#allocation4], 1 }

</bundles_post_ra>
